<compile_context>
chip_gen: v6e
topology: v6e:2x2x1
jax: 0.10.0
libtpu: 0.0.40
codegen_flags: <defaults>
</compile_context>

<pallas_src>
import jax
import jax.numpy as jnp
from jax import lax
from jax.experimental import pallas as pl
from jax.experimental.pallas import tpu as pltpu
import numpy as np

HIDDEN = 100          # nn.LSTM(hidden_size=100)  (hard-coded in the module)
HP = 128              # hidden padded to one full 128-lane block
N_GATES = 4
GW = N_GATES * HP     # 512: each gate gets its own 128-lane-aligned block
CAT_SIZE = 5          # self.cat_size
EMBED_DIM = 100       # forced: LSTM input_size=500 == D*5 and Linear(in=D=hidden=100)


# ---------------------------------------------------------------------------
# Pallas kernel: T_BLK LSTM steps per grid iteration (recurrence only).
# ---------------------------------------------------------------------------
def _pnc_lstm_kernel(gx_ref, whh_ref, y_ref, h_ref, c_ref):
    """gx_ref: (T_BLK, wb, 512) precomputed x@W_ih^T + (b_ih+b_hh), gate-aligned.
    whh_ref: (128, 512) padded W_hh^T.  Emits tanh(h_t) per step, lane-dense
    (wb, 128).  h/c carries persist in VMEM scratch across grid blocks
    (padded lanes of h and c provably stay zero)."""

    @pl.when(pl.program_id(0) == 0)
    def _():
        h_ref[...] = jnp.zeros_like(h_ref)
        c_ref[...] = jnp.zeros_like(c_ref)

    whh = whh_ref[...]                      # (128, 512) — loaded once per block

    @pl.loop(0, gx_ref.shape[0])
    def _(t):
        h = h_ref[...]                      # (wb, 128), padded lanes are 0
        c = c_ref[...]
        # Only the tiny recurrent matmul stays on the serial critical path.
        gates = gx_ref[t] + jnp.dot(h.astype(whh.dtype), whh,
                                    preferred_element_type=jnp.float32)
        # 128-lane-aligned gate slices -> plain vreg selects (no XLU shuffles).
        # PyTorch gate order: [i, f, g, o]. Elementwise math kept in f32.
        i_g = jax.nn.sigmoid(gates[:, 0 * HP:1 * HP])
        f_g = jax.nn.sigmoid(gates[:, 1 * HP:2 * HP])
        g_g = jnp.tanh(gates[:, 2 * HP:3 * HP])
        o_g = jax.nn.sigmoid(gates[:, 3 * HP:4 * HP])
        c_new = f_g * c + i_g * g_g
        h_new = o_g * jnp.tanh(c_new)
        h_ref[...] = h_new
        c_ref[...] = c_new
        y_ref[t] = jnp.tanh(h_new)          # F.tanh fused; lane-dense (128) store


def pnc_lstm_recurrence(gates_x, whh_pad, *, t_blk=128):
    """gates_x: (seq, wb, 512) f32. Returns tanh(h) of shape (seq, wb, 128)."""
    seq, wb, gw = gates_x.shape
    t_blk = min(t_blk, seq)
    n_blk = pl.cdiv(seq, t_blk)
    seq_pad = n_blk * t_blk
    if seq_pad != seq:
        # Padded (garbage) steps run after all real steps -> harmless; sliced off.
        gates_x = jnp.pad(gates_x, ((0, seq_pad - seq), (0, 0), (0, 0)))

    grid_spec = pltpu.PrefetchScalarGridSpec(
        num_scalar_prefetch=0,
        grid=(n_blk,),
        in_specs=[
            pl.BlockSpec((t_blk, wb, gw), lambda b: (b, 0, 0)),
            pl.BlockSpec((HP, gw), lambda b: (0, 0)),   # invariant weight tile
        ],
        out_specs=pl.BlockSpec((t_blk, wb, HP), lambda b: (b, 0, 0)),
        scratch_shapes=[
            pltpu.VMEM((wb, HP), jnp.float32),   # h carry
            pltpu.VMEM((wb, HP), jnp.float32),   # c carry
        ],
    )

    ys = pl.pallas_call(
        _pnc_lstm_kernel,
        out_shape=jax.ShapeDtypeStruct((seq_pad, wb, HP), jnp.float32),
        grid_spec=grid_spec,
        compiler_params=pltpu.CompilerParams(
            dimension_semantics=("arbitrary",),        # serial recurrence
            vmem_limit_bytes=32 * 1024 * 1024),        # safe on v5e/v6e/v7x
    )(gates_x, whh_pad)
    return ys[:seq]


# ---------------------------------------------------------------------------
# Weight preparation: gate-aligned padding (100 -> 128 per gate), transposes,
# pre-summed biases, and a zero-row-padded Linear weight.
# ---------------------------------------------------------------------------
def prep_params(w_ih, w_hh, b_ih, b_hh, w_lin, b_lin):
    in_dim = w_ih.shape[1]
    n_cls = w_lin.shape[0]
    w_ih = jnp.asarray(w_ih, jnp.float32)
    w_hh = jnp.asarray(w_hh, jnp.float32)
    b_sum = jnp.asarray(b_ih, jnp.float32) + jnp.asarray(b_hh, jnp.float32)

    wih_pad = jnp.zeros((in_dim, GW), jnp.float32)   # (5D, 512)
    whh_pad = jnp.zeros((HP, GW), jnp.float32)       # (128, 512)
    b_pad = jnp.zeros((GW,), jnp.float32)            # (512,)
    for g in range(N_GATES):
        sl_in = slice(g * HIDDEN, (g + 1) * HIDDEN)
        sl_out = slice(g * HP, g * HP + HIDDEN)
        wih_pad = wih_pad.at[:, sl_out].set(w_ih[sl_in, :].T)
        whh_pad = whh_pad.at[:HIDDEN, sl_out].set(w_hh[sl_in, :].T)
        b_pad = b_pad.at[sl_out].set(b_sum[sl_in])

    wlin_pad = jnp.zeros((HP, n_cls), jnp.float32).at[:HIDDEN, :].set(
        jnp.asarray(w_lin, jnp.float32).T)
    return wih_pad, whh_pad, b_pad, wlin_pad, jnp.asarray(b_lin, jnp.float32)


# ---------------------------------------------------------------------------
# Plain-JAX glue: embedding lookup + cat_embedding (pure indexing / concat).
# ---------------------------------------------------------------------------
def cat_embedding(x):
    """x: (batch, word_size, D).  Reproduces PNC.cat_embedding exactly:
    padded rows = [0, 0, e0..e_{ws-3}, 0, 0, e_{ws-2}, e_{ws-1}] then a sliding
    window of 5 rows concatenated per position."""
    b, ws, d = x.shape
    zeros2 = jnp.zeros((b, 2, d), x.dtype)
    padded = jnp.concatenate(
        [zeros2, x[:, :ws - 2, :], zeros2, x[:, ws - 2:, :]], axis=1)  # (b, ws+4, d)
    return jnp.concatenate(
        [padded[:, i:i + ws, :] for i in range(CAT_SIZE)], axis=-1)    # (b, ws, 5d)


def pnc_forward(word_ids, params, compute_dtype=jnp.float32):
    """compute_dtype=jnp.bfloat16 is recommended for the MXU operands on
    v6e/v7x; f32 default keeps numerics bit-tight vs. the reference."""
    # dropout_embed / dropout: identity (eval mode).
    x = jnp.take(params["embed"], word_ids, axis=0)            # (batch, ws, D)
    cated = cat_embedding(x).astype(jnp.float32)               # (batch, ws, 5D)
    seq, wb, in_dim = cated.shape

    wih_pad, whh_pad, b_pad, wlin_pad, b_lin = prep_params(
        params["w_ih"], params["w_hh"], params["b_ih"], params["b_hh"],
        params["w_lin"], params["b_lin"])

    # (1) Hoisted input projection: one big matmul with M = seq*wb,
    #     biases pre-summed and folded in (gate-aligned columns).
    gx = (jnp.dot(cated.reshape(seq * wb, in_dim).astype(compute_dtype),
                  wih_pad.astype(compute_dtype),
                  preferred_element_type=jnp.float32)
          + b_pad).reshape(seq, wb, GW)

    # (2) Serial LSTM recurrence in Pallas.
    #     NOTE: batch_first=False quirk -> LSTM "time" axis is the original
    #     batch axis; LSTM "batch" is word_size.
    ys = pnc_lstm_recurrence(gx, whh_pad.astype(compute_dtype))  # (seq, wb, 128)

    # (3) Final Linear(D -> C) hoisted out of the recurrence: one batched matmul.
    n_cls = wlin_pad.shape[1]
    logit = (jnp.dot(ys.reshape(seq * wb, HP), wlin_pad,
                     preferred_element_type=jnp.float32)
             + b_lin).reshape(seq, wb, n_cls)
    return logit                                                # (batch, ws, C)


# ---------------------------------------------------------------------------
# Pure-JAX reference (lax.scan) for a correctness check.
# ---------------------------------------------------------------------------
def ref_lstm_linear(cated, w_ih, w_hh, b_ih, b_hh, w_lin, b_lin):
    wb = cated.shape[1]

    def step(carry, x_t):
        h, c = carry
        gates = x_t @ w_ih.T + h @ w_hh.T + b_ih + b_hh
        i_g, f_g, g_g, o_g = jnp.split(gates, 4, axis=-1)
        i_g = jax.nn.sigmoid(i_g); f_g = jax.nn.sigmoid(f_g)
        g_g = jnp.tanh(g_g); o_g = jax.nn.sigmoid(o_g)
        c = f_g * c + i_g * g_g
        h = o_g * jnp.tanh(c)
        return (h, c), h

    h0 = jnp.zeros((wb, HIDDEN), jnp.float32)
    _, hs = lax.scan(step, (h0, h0), cated)
    return jnp.tanh(hs) @ w_lin.T + b_lin


# ---------------------------------------------------------------------------
if __name__ == "__main__":
    # Small config consistent with the module (D=100, hidden=100 are hard-coded).
    V, D, C, padding_id = 50, EMBED_DIM, 4, 0
    batch, word_size = 2, 8

    key = jax.random.PRNGKey(0)
    k_emb, k_ih, k_hh, k_bih, k_bhh, k_lw, k_lb, k_word = jax.random.split(key, 8)

    embed = jax.random.normal(k_emb, (V, D), jnp.float32) * 0.1
    embed = embed.at[padding_id].set(0.0)                 # padding_idx row = 0

    s = 1.0 / np.sqrt(HIDDEN)
    params = {
        "embed": embed,
        "w_ih": jax.random.uniform(k_ih, (4 * HIDDEN, CAT_SIZE * D), jnp.float32, -s, s),
        "w_hh": jax.random.uniform(k_hh, (4 * HIDDEN, HIDDEN), jnp.float32, -s, s),
        "b_ih": jax.random.uniform(k_bih, (4 * HIDDEN,), jnp.float32, -s, s),
        "b_hh": jax.random.uniform(k_bhh, (4 * HIDDEN,), jnp.float32, -s, s),
        # xavier_uniform-style init for Linear(D -> C)
        "w_lin": jax.random.uniform(
            k_lw, (C, HIDDEN), jnp.float32,
            -np.sqrt(6.0 / (C + HIDDEN)), np.sqrt(6.0 / (C + HIDDEN))),
        "b_lin": jnp.zeros((C,), jnp.float32),
    }

    word = jax.random.randint(k_word, (batch, word_size), 0, V, dtype=jnp.int32)

    logit = jax.block_until_ready(pnc_forward(word, params))
    assert logit.shape == (batch, word_size, C), logit.shape

    # Correctness check against pure-JAX reference.
    x = jnp.take(params["embed"], word, axis=0)
    cated = cat_embedding(x)
    ref = ref_lstm_linear(cated, params["w_ih"], params["w_hh"],
                          params["b_ih"], params["b_hh"],
                          params["w_lin"], params["b_lin"])
    np.testing.assert_allclose(np.asarray(logit), np.asarray(ref),
                               rtol=1e-4, atol=1e-4)

    # TODO(synk): dropout_embed/dropout are eval-mode identities here (no RNG
    # drop); nn.BatchNorm1d is declared in the module but never used in forward.
    print("KERNEL_OK")
</pallas_src>

<mosaic_0001>
module attributes {stable_mosaic.version = 11 : i64} {
  func.func @_pnc_lstm_kernel(%arg0: i32, %arg1: memref<2x8x512xf32, #tpu.memory_space<vmem>>, %arg2: memref<128x512xf32, #tpu.memory_space<vmem>>, %arg3: memref<2x8x128xf32, #tpu.memory_space<vmem>>, %arg4: memref<8x128xf32, #tpu.memory_space<vmem>>, %arg5: memref<8x128xf32, #tpu.memory_space<vmem>>) attributes {dimension_semantics = [#tpu.dimension_semantics<arbitrary>], iteration_bounds = array<i64: 1>, scalar_prefetch = 0 : i64, scratch_operands = 2 : i64, tpu.core_type = #tpu.core_type<tc>, window_params = [{transform_indices = @transform_0, window_bounds = array<i64: 2, 8, 512>}, {pipeline_mode = #tpu.pipeline_mode<synchronous>, transform_indices = @transform_1, window_bounds = array<i64: 128, 512>}, {transform_indices = @transform_2, window_bounds = array<i64: 2, 8, 128>}]} {
    %c0_i32 = arith.constant 0 : i32
    %0 = arith.cmpi eq, %arg0, %c0_i32 : i32
    %1 = arith.extui %0 : i1 to i32
    %c0_i32_0 = arith.constant 0 : i32
    %2 = arith.cmpi ne, %1, %c0_i32_0 : i32
    scf.if %2 {
      %cst = arith.constant 0.000000e+00 : f32
      %5 = vector.broadcast %cst : f32 to vector<8x128xf32>
      %c0_4 = arith.constant 0 : index
      %c0_5 = arith.constant 0 : index
      %6 = vector.load %arg4[%c0_4, %c0_5] : memref<8x128xf32, #tpu.memory_space<vmem>>, vector<8x128xf32>
      tpu.vector_store %arg4[%c0_4, %c0_5], %5 {strides = array<i32>} : memref<8x128xf32, #tpu.memory_space<vmem>>, vector<8x128xf32>,
      %cst_6 = arith.constant 0.000000e+00 : f32
      %7 = vector.broadcast %cst_6 : f32 to vector<8x128xf32>
      %c0_7 = arith.constant 0 : index
      %c0_8 = arith.constant 0 : index
      %8 = vector.load %arg5[%c0_7, %c0_8] : memref<8x128xf32, #tpu.memory_space<vmem>>, vector<8x128xf32>
      tpu.vector_store %arg5[%c0_7, %c0_8], %7 {strides = array<i32>} : memref<8x128xf32, #tpu.memory_space<vmem>>, vector<8x128xf32>,
    } else {
    }
    %c0 = arith.constant 0 : index
    %c0_1 = arith.constant 0 : index
    %3 = vector.load %arg2[%c0, %c0_1] : memref<128x512xf32, #tpu.memory_space<vmem>>, vector<128x512xf32>
    %c0_i32_2 = arith.constant 0 : i32
    %c2_i32 = arith.constant 2 : i32
    %4 = arith.addi %c0_i32_2, %c2_i32 : i32
    %c1_i32 = arith.constant 1 : i32
    scf.for %arg6 = %c0_i32_2 to %4 step %c1_i32  : i32 {
      %c1_i32_4 = arith.constant 1 : i32
      %5 = arith.muli %arg6, %c1_i32_4 : i32
      %c0_i32_5 = arith.constant 0 : i32
      %6 = arith.addi %c0_i32_5, %5 : i32
      %c0_6 = arith.constant 0 : index
      %c0_7 = arith.constant 0 : index
      %7 = vector.load %arg4[%c0_6, %c0_7] : memref<8x128xf32, #tpu.memory_space<vmem>>, vector<8x128xf32>
      %c0_8 = arith.constant 0 : index
      %c0_9 = arith.constant 0 : index
      %8 = vector.load %arg5[%c0_8, %c0_9] : memref<8x128xf32, #tpu.memory_space<vmem>>, vector<8x128xf32>
      %9 = arith.index_cast %6 : i32 to index
      %c0_10 = arith.constant 0 : index
      %c0_11 = arith.constant 0 : index
      %10 = vector.load %arg1[%9, %c0_10, %c0_11] : memref<2x8x512xf32, #tpu.memory_space<vmem>>, vector<1x8x512xf32>
      %11 = vector.shape_cast %10 : vector<1x8x512xf32> to vector<8x512xf32>
      %cst = arith.constant dense<0.000000e+00> : vector<8x512xf32>
      %12 = tpu.matmul %7, %3, %cst {dimension_numbers = #tpu.dot_dimension_numbers<[1], [0], [0], [1], [0, 0, 1, 1], [], []>} : vector<8x128xf32>, vector<128x512xf32>, vector<8x512xf32> -> vector<8x512xf32>
      %13 = arith.addf %11, %12 : vector<8x512xf32>
      %14 = vector.extract_strided_slice %13 {offsets = [0, 0], sizes = [8, 128], strides = [1, 1]} : vector<8x512xf32> to vector<8x128xf32>
      %15 = arith.negf %14 : vector<8x128xf32>
      %16 = math.exp %15 : vector<8x128xf32>
      %cst_12 = arith.constant 1.000000e+00 : f32
      %17 = vector.broadcast %cst_12 : f32 to vector<8x128xf32>
      %18 = arith.addf %17, %16 : vector<8x128xf32>
      %19 = arith.divf %17, %18 : vector<8x128xf32>
      %20 = vector.extract_strided_slice %13 {offsets = [0, 128], sizes = [8, 128], strides = [1, 1]} : vector<8x512xf32> to vector<8x128xf32>
      %21 = arith.negf %20 : vector<8x128xf32>
      %22 = math.exp %21 : vector<8x128xf32>
      %cst_13 = arith.constant 1.000000e+00 : f32
      %23 = vector.broadcast %cst_13 : f32 to vector<8x128xf32>
      %24 = arith.addf %23, %22 : vector<8x128xf32>
      %25 = arith.divf %23, %24 : vector<8x128xf32>
      %26 = vector.extract_strided_slice %13 {offsets = [0, 256], sizes = [8, 128], strides = [1, 1]} : vector<8x512xf32> to vector<8x128xf32>
      %27 = math.tanh %26 : vector<8x128xf32>
      %28 = vector.extract_strided_slice %13 {offsets = [0, 384], sizes = [8, 128], strides = [1, 1]} : vector<8x512xf32> to vector<8x128xf32>
      %29 = arith.negf %28 : vector<8x128xf32>
      %30 = math.exp %29 : vector<8x128xf32>
      %cst_14 = arith.constant 1.000000e+00 : f32
      %31 = vector.broadcast %cst_14 : f32 to vector<8x128xf32>
      %32 = arith.addf %31, %30 : vector<8x128xf32>
      %33 = arith.divf %31, %32 : vector<8x128xf32>
      %34 = arith.mulf %25, %8 : vector<8x128xf32>
      %35 = arith.mulf %19, %27 : vector<8x128xf32>
      %36 = arith.addf %34, %35 : vector<8x128xf32>
      %37 = math.tanh %36 : vector<8x128xf32>
      %38 = arith.mulf %33, %37 : vector<8x128xf32>
      %c0_15 = arith.constant 0 : index
      %c0_16 = arith.constant 0 : index
      %39 = vector.load %arg4[%c0_15, %c0_16] : memref<8x128xf32, #tpu.memory_space<vmem>>, vector<8x128xf32>
      tpu.vector_store %arg4[%c0_15, %c0_16], %38 {strides = array<i32>} : memref<8x128xf32, #tpu.memory_space<vmem>>, vector<8x128xf32>,
      %c0_17 = arith.constant 0 : index
      %c0_18 = arith.constant 0 : index
      %40 = vector.load %arg5[%c0_17, %c0_18] : memref<8x128xf32, #tpu.memory_space<vmem>>, vector<8x128xf32>
      tpu.vector_store %arg5[%c0_17, %c0_18], %36 {strides = array<i32>} : memref<8x128xf32, #tpu.memory_space<vmem>>, vector<8x128xf32>,
      %41 = math.tanh %38 : vector<8x128xf32>
      %42 = arith.index_cast %6 : i32 to index
      %c0_19 = arith.constant 0 : index
      %c0_20 = arith.constant 0 : index
      %43 = vector.load %arg3[%42, %c0_19, %c0_20] : memref<2x8x128xf32, #tpu.memory_space<vmem>>, vector<1x8x128xf32>
      %44 = vector.shape_cast %43 : vector<1x8x128xf32> to vector<8x128xf32>
      %45 = vector.shape_cast %41 : vector<8x128xf32> to vector<1x8x128xf32>
      tpu.vector_store %arg3[%42, %c0_19, %c0_20], %45 {strides = array<i32>} : memref<2x8x128xf32, #tpu.memory_space<vmem>>, vector<1x8x128xf32>,
    }
    %c2_i32_3 = arith.constant 2 : i32
    return
  }
  func.func @transform_0(%arg0: i32) -> (i32, i32, i32) {
    %c0_i32 = arith.constant 0 : i32
    %c0_i32_0 = arith.constant 0 : i32
    %c0_i32_1 = arith.constant 0 : i32
    return %arg0, %c0_i32, %c0_i32_0 : i32, i32, i32
  }
  func.func @transform_1(%arg0: i32) -> (i32, i32) {
    %c0_i32 = arith.constant 0 : i32
    %c0_i32_0 = arith.constant 0 : i32
    %c0_i32_1 = arith.constant 0 : i32
    return %c0_i32, %c0_i32_0 : i32, i32
  }
  func.func @transform_2(%arg0: i32) -> (i32, i32, i32) {
    %c0_i32 = arith.constant 0 : i32
    %c0_i32_0 = arith.constant 0 : i32
    %c0_i32_1 = arith.constant 0 : i32
    return %arg0, %c0_i32, %c0_i32_0 : i32, i32, i32
  }
}

</mosaic_0001>

<bundles_post_ra>
// kernel: tpu_custom_call.1
= control target key start
LH: loop header
LB: loop body
LE: loop exit
PB: predicated region body
PF: predicated region fallthrough
CT: control target
= control target key end

     0   :  { %7 = vsyncpa [#allocation5], 0  ;;  %s679_s0 = inlined_call_operand.hbm [shape: f32[2,8,512], index: 0, kind: input, shape index: {}]   ;;  %s680_s1 = inlined_call_operand.hbm [shape: f32[128,512], index: 1, kind: input, shape index: {}]   ;;  %s681_s2 = inlined_call_operand.hbm [shape: f32[2,8,128], index: 2, kind: output, shape index: {}]  }
   0x1   :  { %8 = vsyncpa [#allocation8], 0 }
   0x2   :  { %9 = vsyncpa [#allocation6], 0  ;;  %s444_s9 = smov [#allocation4]  }
   0x3   :  { %s15_s10 = sshll.u32 %s444_s9, 4  ;;  %s16_s10 = int_to_ptr.vmem [resolvable:$true] %s15_s10 }
   0x4   :  { %s378_s11 = scalar_lea.vmem %s16_s10, 1024  ;;  %p383_p1 = scmp.lt.s32.totalorder %s16_s10, %s16_s10 }
   0x5   :  { %p379_p0 = scmp.ne.s32.totalorder %s16_s10, %s378_s11  ;;  %p384_p2 = scmp.lt.s32.totalorder %s378_s11, %s378_s11 }
   0x7   :  { %p385_p3 = por %p384_p2, %p383_p1 }
   0x9   :  { %p386_p4 = pnand %p385_p3, %p379_p0 }
   0xb   :  { %389 = shalt.err (!%p386_p4)
}
   0xc   :  { %s445_s12 = smov 512   ;;  %s446_s13 = smov 32  }
   0xd   :  { %21 = dma.hbm_to_vmem [thread:$0]  %s679_s0, 1024, %s16_s10, [#allocation5], %s445_s12, %s445_s12, %s446_s13  }
   0xe   :  { %s447_s16 = smov [#allocation7]  }
   0xf   :  { %s27_s17 = sshll.u32 %s447_s16, 4  ;;  %s28_s17 = int_to_ptr.vmem [resolvable:$true] %s27_s17 }
  0x10   :  { %s398_s18 = scalar_lea.vmem %s28_s17, 8192  ;;  %p403_p6 = scmp.lt.s32.totalorder %s28_s17, %s28_s17 }
  0x11   :  { %p399_p5 = scmp.ne.s32.totalorder %s28_s17, %s398_s18  ;;  %p404_p7 = scmp.lt.s32.totalorder %s398_s18, %s398_s18 }
  0x13   :  { %p405_p8 = por %p404_p7, %p403_p6 }
  0x15   :  { %p406_p9 = pnand %p405_p8, %p399_p5 }
  0x17   :  { %409 = shalt.err (!%p406_p9)
}
  0x18   :  { %33 = dma.hbm_to_vmem [thread:$0]  %s680_s1, 8192, %s28_s17, [#allocation8], %s445_s12, %s445_s12, %s446_s13  }
  0x19   :  { %434 = dma.done.wait [#allocation5], 1024  }
  0x1a   :  { %435 = vsyncadd [#allocation5], 4294966272 }
  0x1b   :  { %436 = dma.done.wait [#allocation8], 8192  }
  0x1c   :  { %437 = vsyncadd [#allocation8], 4294959104  ;;  %v448_v0 = vmov 0.0   ;;  %v474_v1 = vld [vmem:[#allocation7] sm:$0xff]  ;;  %v476_v2 = vld [vmem:[#allocation7 + $0x8] sm:$0xff]  ;;  %s602_s0 = smov 0  }
  0x1d   :  { %44 = vst [vmem:[#allocation2] sm:$0xff] %v448_v0  ;;  %45 = vst [vmem:[#allocation3] sm:$0xff] %v448_v0  ;;  %v478_v3 = vld [vmem:[#allocation7 + $0x10] sm:$0xff]  ;;  %v480_v4 = vld [vmem:[#allocation7 + $0x18] sm:$0xff] }
  0x1e   :  { %682 = vst [vmem:[#allocation13_spill] sm:$0xff] %v474_v1  ;;  %683 = vst [vmem:[#allocation14_spill] sm:$0xff] %v476_v2  ;;  %v482_v5 = vld [vmem:[#allocation7 + $0x20] sm:$0xff]  ;;  %v484_v6 = vld [vmem:[#allocation7 + $0x28] sm:$0xff] }
  0x1f   :  { %684 = vst [vmem:[#allocation15_spill] sm:$0xff] %v478_v3  ;;  %685 = vst [vmem:[#allocation16_spill] sm:$0xff] %v480_v4  ;;  %v486_v7 = vld [vmem:[#allocation7 + $0x30] sm:$0xff]  ;;  %v488_v8 = vld [vmem:[#allocation7 + $0x38] sm:$0xff] }
  0x20   :  { %686 = vst [vmem:[#allocation17_spill] sm:$0xff] %v482_v5  ;;  %687 = vst [vmem:[#allocation18_spill] sm:$0xff] %v484_v6  ;;  %v490_v9 = vld [vmem:[#allocation7 + $0x40] sm:$0xff]  ;;  %v492_v10 = vld [vmem:[#allocation7 + $0x48] sm:$0xff] }
  0x21   :  { %688 = vst [vmem:[#allocation19_spill] sm:$0xff] %v486_v7  ;;  %689 = vst [vmem:[#allocation20_spill] sm:$0xff] %v488_v8  ;;  %v494_v11 = vld [vmem:[#allocation7 + $0x50] sm:$0xff]  ;;  %v496_v12 = vld [vmem:[#allocation7 + $0x58] sm:$0xff] }
  0x22   :  { %690 = vst [vmem:[#allocation21_spill] sm:$0xff] %v490_v9  ;;  %691 = vst [vmem:[#allocation22_spill] sm:$0xff] %v492_v10  ;;  %v498_v13 = vld [vmem:[#allocation7 + $0x60] sm:$0xff]  ;;  %v500_v14 = vld [vmem:[#allocation7 + $0x68] sm:$0xff] }
  0x23   :  { %692 = vst [vmem:[#allocation23_spill] sm:$0xff] %v494_v11  ;;  %693 = vst [vmem:[#allocation24_spill] sm:$0xff] %v496_v12  ;;  %v502_v15 = vld [vmem:[#allocation7 + $0x70] sm:$0xff]  ;;  %v504_v16 = vld [vmem:[#allocation7 + $0x78] sm:$0xff] }
  0x24   :  { %694 = vst [vmem:[#allocation25_spill] sm:$0xff] %v498_v13  ;;  %695 = vst [vmem:[#allocation26_spill] sm:$0xff] %v500_v14  ;;  %v506_v17 = vld [vmem:[#allocation7 + $0x80] sm:$0xff]  ;;  %v508_v18 = vld [vmem:[#allocation7 + $0x88] sm:$0xff] }
  0x25   :  { %696 = vst [vmem:[#allocation27_spill] sm:$0xff] %v502_v15  ;;  %697 = vst [vmem:[#allocation28_spill] sm:$0xff] %v504_v16  ;;  %v510_v19 = vld [vmem:[#allocation7 + $0x90] sm:$0xff]  ;;  %v512_v20 = vld [vmem:[#allocation7 + $0x98] sm:$0xff] }
  0x26   :  { %698 = vst [vmem:[#allocation29_spill] sm:$0xff] %v506_v17  ;;  %699 = vst [vmem:[#allocation30_spill] sm:$0xff] %v508_v18  ;;  %v514_v21 = vld [vmem:[#allocation7 + $0xa0] sm:$0xff]  ;;  %v516_v22 = vld [vmem:[#allocation7 + $0xa8] sm:$0xff] }
  0x27   :  { %v518_v23 = vld [vmem:[#allocation7 + $0xb0] sm:$0xff]  ;;  %v520_v24 = vld [vmem:[#allocation7 + $0xb8] sm:$0xff]  ;;  %v522_v25 = vld [vmem:[#allocation7 + $0xc0] sm:$0xff] }
  0x28   :  { %v524_v26 = vld [vmem:[#allocation7 + $0xc8] sm:$0xff]  ;;  %v526_v27 = vld [vmem:[#allocation7 + $0xd0] sm:$0xff]  ;;  %v528_v28 = vld [vmem:[#allocation7 + $0xd8] sm:$0xff] }
  0x29   :  { %v530_v29 = vld [vmem:[#allocation7 + $0xe0] sm:$0xff]  ;;  %v532_v30 = vld [vmem:[#allocation7 + $0xe8] sm:$0xff]  ;;  %v534_v31 = vld [vmem:[#allocation7 + $0xf0] sm:$0xff] }
  0x2a   :  { %v536_v32 = vld [vmem:[#allocation7 + $0xf8] sm:$0xff]  ;;  %v538_v33 = vld [vmem:[#allocation7 + $0x100] sm:$0xff]  ;;  %v540_v34 = vld [vmem:[#allocation7 + $0x108] sm:$0xff] }
  0x2b   :  { %v542_v35 = vld [vmem:[#allocation7 + $0x110] sm:$0xff]  ;;  %v544_v36 = vld [vmem:[#allocation7 + $0x118] sm:$0xff]  ;;  %v546_v37 = vld [vmem:[#allocation7 + $0x120] sm:$0xff] }
  0x2c   :  { %v548_v38 = vld [vmem:[#allocation7 + $0x128] sm:$0xff]  ;;  %v550_v39 = vld [vmem:[#allocation7 + $0x130] sm:$0xff]  ;;  %v552_v40 = vld [vmem:[#allocation7 + $0x138] sm:$0xff] }
  0x2d   :  { %v554_v41 = vld [vmem:[#allocation7 + $0x140] sm:$0xff]  ;;  %v556_v42 = vld [vmem:[#allocation7 + $0x148] sm:$0xff]  ;;  %v558_v43 = vld [vmem:[#allocation7 + $0x150] sm:$0xff] }
  0x2e   :  { %v560_v44 = vld [vmem:[#allocation7 + $0x158] sm:$0xff]  ;;  %v562_v45 = vld [vmem:[#allocation7 + $0x160] sm:$0xff]  ;;  %v564_v46 = vld [vmem:[#allocation7 + $0x168] sm:$0xff] }
  0x2f   :  { %v566_v47 = vld [vmem:[#allocation7 + $0x170] sm:$0xff]  ;;  %v568_v48 = vld [vmem:[#allocation7 + $0x178] sm:$0xff]  ;;  %v570_v49 = vld [vmem:[#allocation7 + $0x180] sm:$0xff] }
  0x30   :  { %v572_v50 = vld [vmem:[#allocation7 + $0x188] sm:$0xff]  ;;  %v574_v51 = vld [vmem:[#allocation7 + $0x190] sm:$0xff]  ;;  %v576_v52 = vld [vmem:[#allocation7 + $0x198] sm:$0xff] }
  0x31   :  { %v578_v53 = vld [vmem:[#allocation7 + $0x1a0] sm:$0xff]  ;;  %v580_v54 = vld [vmem:[#allocation7 + $0x1a8] sm:$0xff]  ;;  %v582_v55 = vld [vmem:[#allocation7 + $0x1b0] sm:$0xff] }
  0x32   :  { %v584_v56 = vld [vmem:[#allocation7 + $0x1b8] sm:$0xff]  ;;  %v586_v57 = vld [vmem:[#allocation7 + $0x1c0] sm:$0xff]  ;;  %v588_v58 = vld [vmem:[#allocation7 + $0x1c8] sm:$0xff] }
  0x33   :  { %v590_v59 = vld [vmem:[#allocation7 + $0x1d0] sm:$0xff]  ;;  %v592_v60 = vld [vmem:[#allocation7 + $0x1d8] sm:$0xff]  ;;  %v594_v61 = vld [vmem:[#allocation7 + $0x1e0] sm:$0xff] }
  0x34   :  { %v596_v62 = vld [vmem:[#allocation7 + $0x1e8] sm:$0xff]  ;;  %v598_v63 = vld [vmem:[#allocation7 + $0x1f0] sm:$0xff]  ;;  %v600_v0 = vld [vmem:[#allocation7 + $0x1f8] sm:$0xff] }
  0x35   :  { %700 = vst [vmem:[#allocation31_spill] sm:$0xff] %v600_v0 }
  0x36 LB: > { %125 = vmatprep.subr.mxu0 %v596_v62  ;;  %v702_v18 = vld [vmem:[#allocation30_spill] sm:$0xff]  ;;  %v703_v17 = vld [vmem:[#allocation29_spill] sm:$0xff]  ;;  %v706_v16 = vld [vmem:[#allocation28_spill] sm:$0xff]  ;;  %s334_s1 = sshll.u32 %s442_s0, 5  ;;  %s333_s22 = sshll.u32 %s442_s0, 3  ;;  %s442_s0 = sphi %s602_s0, %s115_s0  }
  0x37   : > { %126 = vmatpush1.msra.mxu0 %v594_v61  ;;  %v704_v14 = vld [vmem:[#allocation26_spill] sm:$0xff]  ;;  %v705_v13 = vld [vmem:[#allocation25_spill] sm:$0xff]  ;;  %v708_v15 = vld [vmem:[#allocation27_spill] sm:$0xff]  ;;  %s120_s21 = scalar_lea.vmem [#allocation4], %s334_s1  ;;  %s299_s23 = scalar_lea.vmem [#allocation9], %s333_s22 }
  0x38   : > { %127 = vmatprep.subr.mxu0 %v588_v58  ;;  %v707_v10 = vld [vmem:[#allocation22_spill] sm:$0xff]  ;;  %v709_v9 = vld [vmem:[#allocation21_spill] sm:$0xff]  ;;  %v710_v12 = vld [vmem:[#allocation24_spill] sm:$0xff]  ;;  %s115_s0 = sadd.s32 1, %s442_s0  }
  0x39   : > { %128 = vmatpush1.msra.mxu0 %v586_v57  ;;  %v711_v6 = vld [vmem:[#allocation18_spill] sm:$0xff]  ;;  %v712_v11 = vld [vmem:[#allocation23_spill] sm:$0xff]  ;;  %v713_v5 = vld [vmem:[#allocation17_spill] sm:$0xff]  ;;  %p112_p10 = scmp.ge.s32.totalorder %s115_s0, 2  }
  0x3a   : > { %129 = vmatprep.subr.mxu0 %v580_v54  ;;  %v714_v8 = vld [vmem:[#allocation20_spill] sm:$0xff]  ;;  %v715_v2 = vld [vmem:[#allocation14_spill] sm:$0xff]  ;;  %v716_v7 = vld [vmem:[#allocation19_spill] sm:$0xff]  ;;  %s450_s24 = smov (%p112_p10), [#allocation9]  }
  0x3b   : > { %130 = vmatpush1.msra.mxu0 %v578_v53  ;;  %v717_v1 = vld [vmem:[#allocation13_spill] sm:$0xff]  ;;  %v718_v4 = vld [vmem:[#allocation16_spill] sm:$0xff]  ;;  %v719_v3 = vld [vmem:[#allocation15_spill] sm:$0xff]  ;;  %s306_s25 = sshll.u32 (%p112_p10), %s450_s24, 4  ;;  %s307_s25 = int_to_ptr.vmem [resolvable:$true] %s306_s25 }
  0x3c   : > { %v701_v0 = vld [vmem:[#allocation31_spill] sm:$0xff]  ;;  %131 = vmatprep.subr.mxu0 %v572_v50  ;;  %s410_s26 = scalar_lea.vmem (%p112_p10), %s307_s25, 256  ;;  %p415_p12 = scmp.lt.s32.totalorder (%p112_p10), %s307_s25, %s307_s25 }
  0x3d   : > { %196 = vmatprep.subr.mxu1 %v701_v0  ;;  %132 = vmatpush1.msra.mxu0 %v570_v49  ;;  %v449_v0 = vmov 0.0   ;;  %p411_p11 = scmp.ne.s32.totalorder (%p112_p10), %s307_s25, %s410_s26  ;;  %p416_p13 = scmp.lt.s32.totalorder (%p112_p10), %s410_s26, %s410_s26 }
  0x3e   : > { %197 = vmatpush1.msra.mxu1 %v598_v63  ;;  %133 = vmatprep.subr.mxu0 %v564_v46 }
  0x3f   : > { %198 = vmatprep.subr.mxu1 %v592_v60  ;;  %134 = vmatpush1.msra.mxu0 %v562_v45  ;;  %p417_p0 = por (%p112_p10), %p416_p13, %p415_p12 }
  0x40   : > { %199 = vmatpush1.msra.mxu1 %v590_v59  ;;  %135 = vmatprep.subr.mxu0 %v556_v42 }
  0x41   : > { %200 = vmatprep.subr.mxu1 %v584_v56  ;;  %136 = vmatpush1.msra.mxu0 %v554_v41  ;;  %p418_p1 = pnand (%p112_p10), %p417_p0, %p411_p11 }
  0x42   : > { %201 = vmatpush1.msra.mxu1 %v582_v55  ;;  %137 = vmatprep.subr.mxu0 %v548_v38 }
  0x43   : > { %202 = vmatprep.subr.mxu1 %v576_v52  ;;  %138 = vmatpush1.msra.mxu0 %v546_v37 }
  0x44   : > { %203 = vmatpush1.msra.mxu1 %v574_v51  ;;  %139 = vmatprep.subr.mxu0 %v540_v34 }
  0x45   : > { %204 = vmatprep.subr.mxu1 %v568_v48  ;;  %140 = vmatpush1.msra.mxu0 %v538_v33 }
  0x46   : > { %205 = vmatpush1.msra.mxu1 %v566_v47  ;;  %189 = vmatprep.mubr.f32.mxu0 %v449_v0 }
  0x47   : > { %206 = vmatprep.subr.mxu1 %v560_v44  ;;  %141 = vmatprep.subr.mxu0 %v532_v30 }
  0x48   : > { %207 = vmatpush1.msra.mxu1 %v558_v43  ;;  %142 = vmatpush1.msra.mxu0 %v530_v29 }
  0x49   : > { %208 = vmatprep.subr.mxu1 %v552_v40  ;;  %143 = vmatprep.subr.mxu0 %v524_v26 }
  0x4a   : > { %209 = vmatpush1.msra.mxu1 %v550_v39  ;;  %144 = vmatpush1.msra.mxu0 %v522_v25 }
  0x4b   : > { %210 = vmatprep.subr.mxu1 %v544_v36  ;;  %145 = vmatprep.subr.mxu0 %v516_v22 }
  0x4c   : > { %211 = vmatpush1.msra.mxu1 %v542_v35  ;;  %146 = vmatpush1.msra.mxu0 %v514_v21 }
  0x4d   : > { %212 = vmatprep.subr.mxu1 %v536_v32  ;;  %147 = vmatprep.subr.mxu0 %v702_v18 }
  0x4e   : > { %213 = vmatpush1.msra.mxu1 %v534_v31  ;;  %148 = vmatpush1.msra.mxu0 %v703_v17 }
  0x4f   : > { %214 = vmatprep.subr.mxu1 %v528_v28  ;;  %149 = vmatprep.subr.mxu0 %v704_v14  ;;  %v116_v14 = vld [vmem:[#allocation2] sm:$0xff] }
  0x50   : > { %215 = vmatpush1.msra.mxu1 %v526_v27  ;;  %150 = vmatpush1.msra.mxu0 %v705_v13  ;;  %v123_v13 = vld [vmem:[%s120_s21 + $0x10] sm:$0xff] }
  0x51   : > { %216 = vmatprep.subr.mxu1 %v520_v24  ;;  %151 = vmatprep.subr.mxu0 %v707_v10 }
  0x52   : > { %217 = vmatpush1.msra.mxu1 %v518_v23  ;;  %152 = vmatpush1.msra.mxu0 %v709_v9  ;;  %v122_v9 = vld [vmem:[%s120_s21 + $0x8] sm:$0xff] }
  0x53   : > { %218 = vmatprep.subr.mxu1 %v512_v20  ;;  %153 = vmatprep.subr.mxu0 %v711_v6  ;;  %v121_v6 = vld [vmem:[%s120_s21] sm:$0xff] }
  0x54   : > { %219 = vmatpush1.msra.mxu1 %v510_v19  ;;  %154 = vmatpush1.msra.mxu0 %v713_v5 }
  0x55   : > { %220 = vmatprep.subr.mxu1 %v706_v16  ;;  %155 = vmatprep.subr.mxu0 %v715_v2 }
  0x56   : > { %221 = vmatpush1.msra.mxu1 %v708_v15  ;;  %156 = vmatpush1.msra.mxu0 %v717_v1  ;;  %v124_v1 = vld [vmem:[%s120_s21 + $0x18] sm:$0xff] }
  0x57   : > { %222 = vmatprep.subr.mxu1 %v710_v12  ;;  %190 = vmatmul.mubr.f32.vlgmr.msra.gmra.mxu0 %v116_v14 }
  0x58   : > { %223 = vmatpush1.msra.mxu1 %v712_v11  ;;  %260 = vmatprep.mubr.f32.mxu1 %v449_v0 }
  0x59   : > { %224 = vmatprep.subr.mxu1 %v714_v8 }
  0x5a   : > { %225 = vmatpush1.msra.mxu1 %v716_v7 }
  0x5b   : > { %226 = vmatprep.subr.mxu1 %v718_v4 }
  0x5c   : > { %227 = vmatpush1.msra.mxu1 %v719_v3 }
  0x5d   : > { %261 = vmatmul.mubr.f32.vlgmr.msra.gmra.mxu1 %v116_v14 }
 0x117   : > { %v191_v5 = vpop.f32.mrf.mxu0 }
 0x118   : > { %v267_v10 = vadd.f32 %v191_v5, %v121_v6 }
 0x119   : > { %v193_v8 = vpop.f32.mrf.mxu0 }
 0x11a   : > { %v330_v11 = vmul.f32 -1.442695, %v267_v10  ;;  %v268_v2 = vadd.f32 %v193_v8, %v122_v9  ;;  %v117_v9 = vld [vmem:[#allocation3] sm:$0xff] }
 0x11c   : > { %352 = vpow2.f32 %v330_v11  ;;  %v331_v7 = vmul.f32 -1.442695, %v268_v2 }
 0x11d   : > { %v262_v12 = vpop.f32.mrf.mxu1 }
 0x11e   : > { %354 = vpow2.f32 %v331_v7  ;;  %v269_v3 = vadd.f32 %v262_v12, %v123_v13 }
 0x11f   : > { %v264_v4 = vpop.f32.mrf.mxu1 }
 0x120   : > { %v270_v15 = vadd.f32 %v264_v4, %v124_v1  ;;  %356 = vtanh.f32 %v269_v3 }
 0x122   : > { %v332_v0 = vmul.f32 -1.442695, %v270_v15 }
 0x124   : > { %358 = vpow2.f32 %v332_v0 }
 0x129   : > { %v353_v14 = vpop.eup %352 }
 0x12a   : > { %v274_v16 = vadd.f32 1.0, %v353_v14 }
 0x12b   : > { %v355_v17 = vpop.eup %354 }
 0x12c   : > { %360 = vrcp.f32 %v274_v16  ;;  %v280_v5 = vadd.f32 1.0, %v355_v17 }
 0x12d   : > { %v357_v6 = vpop.eup %356 }
 0x12e   : > { %362 = vrcp.f32 %v280_v5 }
 0x131   : > { %v359_v8 = vpop.eup %358 }
 0x132   : > { %v287_v10 = vadd.f32 1.0, %v359_v8 }
 0x134   : > { %364 = vrcp.f32 %v287_v10 }
 0x139   : > { %v361_v2 = vpop.eup %360 }
 0x13a   : > { %v291_v18 = vmul.f32 %v361_v2, %v357_v6 }
 0x13b   : > { %v363_v7 = vpop.eup %362 }
 0x13c   : > { %v290_v11 = vmul.f32 %v363_v7, %v117_v9 }
 0x13e   : > { %v292_v1 = vadd.f32 %v291_v18, %v290_v11 }
 0x140   : > { %366 = vtanh.f32 %v292_v1  ;;  %296 = vst [vmem:[#allocation3] sm:$0xff] %v292_v1 }
 0x141   : > { %v365_v4 = vpop.eup %364 }
 0x14d   : > { %v367_v3 = vpop.eup %366 }
 0x14e   : > { %v294_v12 = vmul.f32 %v367_v3, %v365_v4 }
 0x150   : > { %295 = vst [vmem:[#allocation2] sm:$0xff] %v294_v12  ;;  %368 = vtanh.f32 %v294_v12 }
 0x15a   :  { %114 = sbr.rel (!%p112_p10) target bundleno = 54 (0x36), region = 49 }
 0x15d   : > { %v369_v13 = vpop.eup %368 }
 0x15e   : > { %300 = vst [vmem:[%s299_s23] sm:$0xff] %v369_v13 }
 0x15f   :  { %421 = shalt.err (!%p418_p1)
}
 0x160   :  { %s451_s27 = smov 128   ;;  %s452_s28 = smov 8  }
 0x161   :  { %312 = dma.vmem_to_hbm [thread:$0]  %s307_s25, 256, %s681_s2, [#allocation6], %s451_s27, %s451_s27, %s452_s28  }
 0x162   :  { %438 = dma.done.wait [#allocation6], 256  }
 0x163   :  { %439 = vsyncadd [#allocation6], 4294967040 }
 0x164   :  { %316 = vsyncpa [#allocation5], 1 }
 0x165   :  { %317 = vsyncpa [#allocation8], 1 }
 0x166   :  { %318 = vsyncpa [#allocation6], 1 }

</bundles_post_ra>
